<compile_context>
chip_gen: v7x
topology: tpu7x:2x2x1
jax: 0.10.0
libtpu: 0.0.40
codegen_flags: <defaults>
</compile_context>

<pallas_src>
import functools

import jax
import jax.numpy as jnp
from jax import lax
from jax.experimental import pallas as pl
from jax.experimental.pallas import tpu as pltpu

KH = KW = 4
BN_EPS = 1e-5
# bf16 MXU operands (recommended on v5e/v6e/v7x).  Set to jnp.float32 for a
# bit-tight comparison against the f32 reference.
MXU_DTYPE = jnp.bfloat16


# ----------------------------------------------------------------------------
# Single fused kernel: one im2col matmul for the whole batch + folded BN +
# ReLU + masked global avg/max pool + attention fc (fc2 folded to its column
# mean) -> one pre-sigmoid scalar.
# ----------------------------------------------------------------------------
def _fused_gate_kernel(p_ref, w_ref, scale_ref, shift_ref, w1_ref, b1_ref,
                       w2m_ref, out_ref, *, n_batch, p_valid, p_pad):
    # p_ref:       [N*Pp, K]   im2col patches, P padded to Pp (pad rows = 0)
    # w_ref:       [K, Cout]   conv weight in im2col layout
    # scale/shift: [1, Cout]   folded eval-mode BatchNorm of the conv
    # w1_ref:      [Cout, Ch]  fc1 weight with BN1 scale folded in
    # b1_ref:      [1, Ch]     folded BN1 shift
    # w2m_ref:     [1, Ch]     mean over the Cout axis of fc2 weight
    # out_ref:     [1, 1]      sum over batch of (h_avg + h_max) . w2_mean
    acc = jnp.dot(p_ref[...], w_ref[...],
                  preferred_element_type=jnp.float32)          # [N*Pp, Cout] f32
    y = jnp.maximum(acc * scale_ref[...] + shift_ref[...], 0.0)

    cout = y.shape[1]
    # Mask padded rows: they carry acc == 0 -> y == ReLU(shift) != 0 otherwise.
    valid = lax.broadcasted_iota(jnp.int32, (p_pad, cout), 0) < p_valid
    inv_p = 1.0 / float(p_valid)

    pooled_rows = []
    for n in range(n_batch):                   # static unroll, N is tiny
        y_n = jnp.where(valid, y[n * p_pad:(n + 1) * p_pad, :], 0.0)
        pooled_rows.append(jnp.sum(y_n, axis=0, keepdims=True) * inv_p)  # avg
        pooled_rows.append(jnp.max(y_n, axis=0, keepdims=True))          # max (y >= 0)
    pooled = jnp.concatenate(pooled_rows, axis=0)                        # [2N, Cout]

    # Attention fc, single pass over all 2N pooled rows.
    h = jnp.dot(pooled, w1_ref[...], preferred_element_type=jnp.float32)  # [2N, Ch]
    h = jnp.maximum(h + b1_ref[...], 0.0)
    contrib = jnp.sum(h * w2m_ref[...], axis=1, keepdims=True)            # [2N, 1]
    out_ref[...] = jnp.sum(contrib, axis=0, keepdims=True)                # [1, 1]


# ----------------------------------------------------------------------------
# Parameter construction (deterministic, mirrors nn.Module shapes).
# ----------------------------------------------------------------------------
def init_params(key, inplanes):
    Cin = 2 * inplanes
    Cout = 4 * inplanes
    Ch = Cout // 8
    ks = jax.random.split(key, 11)
    p = {}
    p["conv_w"] = 0.1 * jax.random.normal(ks[0], (Cout, Cin, KH, KW), jnp.float32)
    p["bn_g"] = 1.0 + 0.1 * jax.random.normal(ks[1], (Cout,), jnp.float32)
    p["bn_b"] = 0.1 * jax.random.normal(ks[2], (Cout,), jnp.float32)
    p["bn_m"] = 0.1 * jax.random.normal(ks[3], (Cout,), jnp.float32)
    p["bn_v"] = 0.5 + jax.random.uniform(ks[4], (Cout,), jnp.float32)
    p["fc1_w"] = 0.2 * jax.random.normal(ks[5], (Ch, Cout, 1, 1), jnp.float32)
    p["bn1_g"] = 1.0 + 0.1 * jax.random.normal(ks[6], (Ch,), jnp.float32)
    p["bn1_b"] = 0.1 * jax.random.normal(ks[7], (Ch,), jnp.float32)
    p["bn1_m"] = 0.1 * jax.random.normal(ks[8], (Ch,), jnp.float32)
    p["bn1_v"] = 0.5 + jax.random.uniform(ks[9], (Ch,), jnp.float32)
    p["fc2_w"] = 0.2 * jax.random.normal(ks[10], (Cout, Ch, 1, 1), jnp.float32)
    return p


def _fold_bn(gamma, beta, mean, var):
    scale = gamma / jnp.sqrt(var + BN_EPS)
    shift = beta - mean * scale
    return scale, shift


def _im2col(x_nhwc):
    # [N, H, W, Cin] -> [N, Ho*Wo, KH*KW*Cin].  Pure layout work, done once in
    # the XLA wrapper (free there) instead of strided slice/reshape copies
    # inside the kernel.
    N, H, W, Cin = x_nhwc.shape
    Ho, Wo = H - KH + 1, W - KW + 1
    cols = [x_nhwc[:, kh:kh + Ho, kw:kw + Wo, :]
            for kh in range(KH) for kw in range(KW)]
    p = jnp.concatenate(cols, axis=-1)                 # [N, Ho, Wo, KH*KW*Cin]
    return p.reshape(N, Ho * Wo, KH * KW * Cin)


# ----------------------------------------------------------------------------
# Wrapper: gate_for_new forward.
# ----------------------------------------------------------------------------
def gate_for_new_forward(x_nchw, params):
    N, Cin, H, W = x_nchw.shape
    Ho, Wo = H - KH + 1, W - KW + 1
    P = Ho * Wo
    Pp = ((P + 7) // 8) * 8               # pad rows to a sublane multiple (169 -> 176)
    K = KH * KW * Cin

    x = jnp.transpose(x_nchw, (0, 2, 3, 1)).astype(jnp.float32)    # NHWC
    patches = _im2col(x)                                           # [N, P, K]
    patches = jnp.pad(patches, ((0, 0), (0, Pp - P), (0, 0)))      # zero pad rows
    patches = patches.reshape(N * Pp, K).astype(MXU_DTYPE)         # [N*Pp, K]

    conv_w = params["conv_w"]                                      # [Cout, Cin, KH, KW]
    Cout = conv_w.shape[0]
    # im2col weight layout: row (kh*KW + kw)*Cin + c  <->  conv_w[o, c, kh, kw]
    w_mat = jnp.transpose(conv_w, (2, 3, 1, 0)).reshape(K, Cout).astype(MXU_DTYPE)

    scale0, shift0 = _fold_bn(params["bn_g"], params["bn_b"],
                              params["bn_m"], params["bn_v"])
    scale0 = scale0.reshape(1, Cout)
    shift0 = shift0.reshape(1, Cout)

    Ch = params["fc1_w"].shape[0]
    s1, b1 = _fold_bn(params["bn1_g"], params["bn1_b"],
                      params["bn1_m"], params["bn1_v"])
    # Fold BN1 scale into fc1: (pooled @ w1.T) * s1 == pooled @ (w1.T * s1)
    w1s = (params["fc1_w"].reshape(Ch, Cout).T * s1[None, :]).astype(jnp.float32)
    b1 = b1.reshape(1, Ch).astype(jnp.float32)
    # fc2 is linear with no bias/BN and only mean(att) is consumed downstream:
    # fold it to its per-hidden-channel column mean.
    w2m = jnp.mean(params["fc2_w"].reshape(Cout, Ch), axis=0).reshape(1, Ch)

    kernel = functools.partial(_fused_gate_kernel,
                               n_batch=N, p_valid=P, p_pad=Pp)

    att_sum = pl.pallas_call(
        kernel,
        grid=(1,),
        in_specs=[
            pl.BlockSpec((N * Pp, K), lambda i: (0, 0)),
            pl.BlockSpec((K, Cout), lambda i: (0, 0)),
            pl.BlockSpec((1, Cout), lambda i: (0, 0)),
            pl.BlockSpec((1, Cout), lambda i: (0, 0)),
            pl.BlockSpec((Cout, Ch), lambda i: (0, 0)),
            pl.BlockSpec((1, Ch), lambda i: (0, 0)),
            pl.BlockSpec((1, Ch), lambda i: (0, 0)),
        ],
        out_specs=pl.BlockSpec((1, 1), lambda i: (0, 0)),
        out_shape=jax.ShapeDtypeStruct((1, 1), jnp.float32),
        compiler_params=pltpu.CompilerParams(
            dimension_semantics=("arbitrary",)),
    )(patches, w_mat, scale0, shift0, w1s, b1, w2m)

    # torch: x2 = sigmoid(flatten(att, 1).mean()); mean over N*Cout elements
    # == (1/N) * kernel scalar because w2m already averages over Cout.
    return jax.nn.sigmoid(att_sum[0, 0] * (1.0 / N))


# ----------------------------------------------------------------------------
# Pure-JAX reference (mirrors the PyTorch forward, eval-mode BN).
# ----------------------------------------------------------------------------
def reference_forward(x_nchw, params):
    y = lax.conv_general_dilated(
        x_nchw.astype(jnp.float32), params["conv_w"],
        window_strides=(1, 1), padding="VALID",
        dimension_numbers=("NCHW", "OIHW", "NCHW"))
    s0, sh0 = _fold_bn(params["bn_g"], params["bn_b"],
                       params["bn_m"], params["bn_v"])
    y = jnp.maximum(y * s0[None, :, None, None] + sh0[None, :, None, None], 0.0)
    avg = jnp.mean(y, axis=(2, 3))
    mx = jnp.max(y, axis=(2, 3))

    Ch = params["fc1_w"].shape[0]
    Cout = params["conv_w"].shape[0]
    w1 = params["fc1_w"].reshape(Ch, Cout)
    w2 = params["fc2_w"].reshape(Cout, Ch)
    s1, b1 = _fold_bn(params["bn1_g"], params["bn1_b"],
                      params["bn1_m"], params["bn1_v"])

    def fc(v):
        h = jnp.maximum(v @ w1.T * s1 + b1, 0.0)
        return h @ w2.T

    out = fc(avg) + fc(mx)
    return jax.nn.sigmoid(jnp.mean(out))


if __name__ == "__main__":
    inplanes = 4          # conv: 8 -> 16 channels, attention hidden = 2
    N, H, W = 2, 16, 16
    Cin = 2 * inplanes    # K = KH*KW*Cin = 128 -> full MXU contraction dim

    key = jax.random.PRNGKey(0)
    kx, kp = jax.random.split(key)
    x = jax.random.normal(kx, (N, Cin, H, W), jnp.float32)   # PyTorch NCHW input
    params = init_params(kp, inplanes)

    result = jax.block_until_ready(gate_for_new_forward(x, params))
    ref = jax.block_until_ready(reference_forward(x, params))

    tol = 1e-2 if MXU_DTYPE == jnp.bfloat16 else 1e-4
    assert jnp.isfinite(result), "non-finite kernel output"
    assert jnp.allclose(result, ref, atol=tol, rtol=tol), (result, ref)
    print("KERNEL_OK")
</pallas_src>

<mosaic_0001>
module attributes {stable_mosaic.version = 11 : i64} {
  func.func @_fused_gate_kernel(%arg0: i32, %arg1: memref<352x128xbf16, #tpu.memory_space<vmem>>, %arg2: memref<128x16xbf16, #tpu.memory_space<vmem>>, %arg3: memref<1x16xf32, #tpu.memory_space<vmem>>, %arg4: memref<1x16xf32, #tpu.memory_space<vmem>>, %arg5: memref<16x2xf32, #tpu.memory_space<vmem>>, %arg6: memref<1x2xf32, #tpu.memory_space<vmem>>, %arg7: memref<1x2xf32, #tpu.memory_space<vmem>>, %arg8: memref<1x1xf32, #tpu.memory_space<vmem>>) attributes {dimension_semantics = [#tpu.dimension_semantics<arbitrary>], iteration_bounds = array<i64: 1>, scalar_prefetch = 0 : i64, scratch_operands = 0 : i64, tpu.core_type = #tpu.core_type<tc>, window_params = [{pipeline_mode = #tpu.pipeline_mode<synchronous>, transform_indices = @transform_0, window_bounds = array<i64: 352, 128>}, {pipeline_mode = #tpu.pipeline_mode<synchronous>, transform_indices = @transform_1, window_bounds = array<i64: 128, 16>}, {pipeline_mode = #tpu.pipeline_mode<synchronous>, transform_indices = @transform_2, window_bounds = array<i64: 1, 16>}, {pipeline_mode = #tpu.pipeline_mode<synchronous>, transform_indices = @transform_3, window_bounds = array<i64: 1, 16>}, {pipeline_mode = #tpu.pipeline_mode<synchronous>, transform_indices = @transform_4, window_bounds = array<i64: 16, 2>}, {pipeline_mode = #tpu.pipeline_mode<synchronous>, transform_indices = @transform_5, window_bounds = array<i64: 1, 2>}, {pipeline_mode = #tpu.pipeline_mode<synchronous>, transform_indices = @transform_6, window_bounds = array<i64: 1, 2>}, {pipeline_mode = #tpu.pipeline_mode<synchronous>, transform_indices = @transform_7, window_bounds = array<i64: 1, 1>}]} {
    %c0 = arith.constant 0 : index
    %c0_0 = arith.constant 0 : index
    %0 = vector.load %arg1[%c0, %c0_0] : memref<352x128xbf16, #tpu.memory_space<vmem>>, vector<352x128xbf16>
    %c0_1 = arith.constant 0 : index
    %c0_2 = arith.constant 0 : index
    %1 = vector.load %arg2[%c0_1, %c0_2] : memref<128x16xbf16, #tpu.memory_space<vmem>>, vector<128x16xbf16>
    %cst = arith.constant dense<0.000000e+00> : vector<352x16xf32>
    %2 = tpu.matmul %0, %1, %cst {dimension_numbers = #tpu.dot_dimension_numbers<[1], [0], [0], [1], [0, 0, 1, 1], [], []>} : vector<352x128xbf16>, vector<128x16xbf16>, vector<352x16xf32> -> vector<352x16xf32>
    %c0_3 = arith.constant 0 : index
    %c0_4 = arith.constant 0 : index
    %3 = vector.load %arg3[%c0_3, %c0_4] : memref<1x16xf32, #tpu.memory_space<vmem>>, vector<1x16xf32>
    %4 = vector.broadcast %3 : vector<1x16xf32> to vector<352x16xf32>
    %5 = arith.mulf %2, %4 : vector<352x16xf32>
    %c0_5 = arith.constant 0 : index
    %c0_6 = arith.constant 0 : index
    %6 = vector.load %arg4[%c0_5, %c0_6] : memref<1x16xf32, #tpu.memory_space<vmem>>, vector<1x16xf32>
    %7 = vector.broadcast %6 : vector<1x16xf32> to vector<352x16xf32>
    %8 = arith.addf %5, %7 : vector<352x16xf32>
    %cst_7 = arith.constant 0.000000e+00 : f32
    %9 = vector.broadcast %cst_7 : f32 to vector<352x16xf32>
    %10 = arith.maximumf %8, %9 : vector<352x16xf32>
    %11 = tpu.iota {dimensions = array<i32: 0>} : vector<176x16xi32>
    %c169_i32 = arith.constant 169 : i32
    %12 = vector.broadcast %c169_i32 : i32 to vector<176x16xi32>
    %13 = arith.cmpi slt, %11, %12 : vector<176x16xi32>
    %14 = vector.extract_strided_slice %10 {offsets = [0, 0], sizes = [176, 16], strides = [1, 1]} : vector<352x16xf32> to vector<176x16xf32>
    %cst_8 = arith.constant 0.000000e+00 : f32
    %15 = vector.broadcast %cst_8 : f32 to vector<176x16xf32>
    %16 = arith.select %13, %14, %15 : vector<176x16xi1>, vector<176x16xf32>
    %cst_9 = arith.constant dense<0.000000e+00> : vector<16xf32>
    %17 = vector.multi_reduction <add>, %16, %cst_9 [0] : vector<176x16xf32> to vector<16xf32>
    %18 = vector.shape_cast %17 : vector<16xf32> to vector<1x16xf32>
    %cst_10 = arith.constant 5.917160e-03 : f32
    %19 = vector.broadcast %cst_10 : f32 to vector<1x16xf32>
    %20 = arith.mulf %18, %19 : vector<1x16xf32>
    %cst_11 = arith.constant dense<0xFF800000> : vector<16xf32>
    %21 = vector.multi_reduction <maximumf>, %16, %cst_11 [0] : vector<176x16xf32> to vector<16xf32>
    %22 = vector.shape_cast %21 : vector<16xf32> to vector<1x16xf32>
    %23 = vector.extract_strided_slice %10 {offsets = [176, 0], sizes = [176, 16], strides = [1, 1]} : vector<352x16xf32> to vector<176x16xf32>
    %cst_12 = arith.constant 0.000000e+00 : f32
    %24 = vector.broadcast %cst_12 : f32 to vector<176x16xf32>
    %25 = arith.select %13, %23, %24 : vector<176x16xi1>, vector<176x16xf32>
    %cst_13 = arith.constant dense<0.000000e+00> : vector<16xf32>
    %26 = vector.multi_reduction <add>, %25, %cst_13 [0] : vector<176x16xf32> to vector<16xf32>
    %27 = vector.shape_cast %26 : vector<16xf32> to vector<1x16xf32>
    %cst_14 = arith.constant 5.917160e-03 : f32
    %28 = vector.broadcast %cst_14 : f32 to vector<1x16xf32>
    %29 = arith.mulf %27, %28 : vector<1x16xf32>
    %cst_15 = arith.constant dense<0xFF800000> : vector<16xf32>
    %30 = vector.multi_reduction <maximumf>, %25, %cst_15 [0] : vector<176x16xf32> to vector<16xf32>
    %31 = vector.shape_cast %30 : vector<16xf32> to vector<1x16xf32>
    %32 = tpu.concatenate %20, %22, %29, %31 in 0 : vector<1x16xf32>, vector<1x16xf32>, vector<1x16xf32>, vector<1x16xf32> -> vector<4x16xf32>
    %c0_16 = arith.constant 0 : index
    %c0_17 = arith.constant 0 : index
    %33 = vector.load %arg5[%c0_16, %c0_17] : memref<16x2xf32, #tpu.memory_space<vmem>>, vector<16x2xf32>
    %cst_18 = arith.constant dense<0.000000e+00> : vector<4x2xf32>
    %34 = tpu.matmul %32, %33, %cst_18 {dimension_numbers = #tpu.dot_dimension_numbers<[1], [0], [0], [1], [0, 0, 1, 1], [], []>} : vector<4x16xf32>, vector<16x2xf32>, vector<4x2xf32> -> vector<4x2xf32>
    %c0_19 = arith.constant 0 : index
    %c0_20 = arith.constant 0 : index
    %35 = vector.load %arg6[%c0_19, %c0_20] : memref<1x2xf32, #tpu.memory_space<vmem>>, vector<1x2xf32>
    %36 = vector.broadcast %35 : vector<1x2xf32> to vector<4x2xf32>
    %37 = arith.addf %34, %36 : vector<4x2xf32>
    %cst_21 = arith.constant 0.000000e+00 : f32
    %38 = vector.broadcast %cst_21 : f32 to vector<4x2xf32>
    %39 = arith.maximumf %37, %38 : vector<4x2xf32>
    %c0_22 = arith.constant 0 : index
    %c0_23 = arith.constant 0 : index
    %40 = vector.load %arg7[%c0_22, %c0_23] : memref<1x2xf32, #tpu.memory_space<vmem>>, vector<1x2xf32>
    %41 = vector.broadcast %40 : vector<1x2xf32> to vector<4x2xf32>
    %42 = arith.mulf %39, %41 : vector<4x2xf32>
    %cst_24 = arith.constant dense<0.000000e+00> : vector<4xf32>
    %43 = vector.multi_reduction <add>, %42, %cst_24 [1] : vector<4x2xf32> to vector<4xf32>
    %44 = vector.shape_cast %43 : vector<4xf32> to vector<4x1xf32>
    %cst_25 = arith.constant dense<0.000000e+00> : vector<1xf32>
    %45 = vector.multi_reduction <add>, %44, %cst_25 [0] : vector<4x1xf32> to vector<1xf32>
    %46 = vector.shape_cast %45 : vector<1xf32> to vector<1x1xf32>
    %c0_26 = arith.constant 0 : index
    %c0_27 = arith.constant 0 : index
    %47 = vector.load %arg8[%c0_26, %c0_27] : memref<1x1xf32, #tpu.memory_space<vmem>>, vector<1x1xf32>
    tpu.vector_store %arg8[%c0_26, %c0_27], %46 {strides = array<i32>} : memref<1x1xf32, #tpu.memory_space<vmem>>, vector<1x1xf32>,
    return
  }
  func.func @transform_0(%arg0: i32) -> (i32, i32) {
    %c0_i32 = arith.constant 0 : i32
    %c0_i32_0 = arith.constant 0 : i32
    %c0_i32_1 = arith.constant 0 : i32
    return %c0_i32, %c0_i32_0 : i32, i32
  }
  func.func @transform_1(%arg0: i32) -> (i32, i32) {
    %c0_i32 = arith.constant 0 : i32
    %c0_i32_0 = arith.constant 0 : i32
    %c0_i32_1 = arith.constant 0 : i32
    return %c0_i32, %c0_i32_0 : i32, i32
  }
  func.func @transform_2(%arg0: i32) -> (i32, i32) {
    %c0_i32 = arith.constant 0 : i32
    %c0_i32_0 = arith.constant 0 : i32
    %c0_i32_1 = arith.constant 0 : i32
    return %c0_i32, %c0_i32_0 : i32, i32
  }
  func.func @transform_3(%arg0: i32) -> (i32, i32) {
    %c0_i32 = arith.constant 0 : i32
    %c0_i32_0 = arith.constant 0 : i32
    %c0_i32_1 = arith.constant 0 : i32
    return %c0_i32, %c0_i32_0 : i32, i32
  }
  func.func @transform_4(%arg0: i32) -> (i32, i32) {
    %c0_i32 = arith.constant 0 : i32
    %c0_i32_0 = arith.constant 0 : i32
    %c0_i32_1 = arith.constant 0 : i32
    return %c0_i32, %c0_i32_0 : i32, i32
  }
  func.func @transform_5(%arg0: i32) -> (i32, i32) {
    %c0_i32 = arith.constant 0 : i32
    %c0_i32_0 = arith.constant 0 : i32
    %c0_i32_1 = arith.constant 0 : i32
    return %c0_i32, %c0_i32_0 : i32, i32
  }
  func.func @transform_6(%arg0: i32) -> (i32, i32) {
    %c0_i32 = arith.constant 0 : i32
    %c0_i32_0 = arith.constant 0 : i32
    %c0_i32_1 = arith.constant 0 : i32
    return %c0_i32, %c0_i32_0 : i32, i32
  }
  func.func @transform_7(%arg0: i32) -> (i32, i32) {
    %c0_i32 = arith.constant 0 : i32
    %c0_i32_0 = arith.constant 0 : i32
    %c0_i32_1 = arith.constant 0 : i32
    return %c0_i32, %c0_i32_0 : i32, i32
  }
}

</mosaic_0001>

<bundles_post_ra>
// kernel: tpu_custom_call.1
= control target key start
LH: loop header
LB: loop body
LE: loop exit
PB: predicated region body
PF: predicated region fallthrough
CT: control target
= control target key end

     0   :  { %12 = vsyncpa [#allocation3], 0  ;;  %s1813_s0 = inlined_call_operand.hbm [shape: bf16[352,128], index: 0, kind: input, shape index: {}]   ;;  %s1814_s1 = inlined_call_operand.vmem [shape: bf16[128,16], index: 1, kind: input, shape index: {}]   ;;  %s1815_s2 = inlined_call_operand.vmem [shape: f32[1,16], index: 2, kind: input, shape index: {}]   ;;  %s1816_s3 = inlined_call_operand.vmem [shape: f32[1,16], index: 3, kind: input, shape index: {}]   ;;  %s1817_s4 = inlined_call_operand.vmem [shape: f32[16,2], index: 4, kind: input, shape index: {}]   ;;  %s1818_s5 = inlined_call_operand.vmem [shape: f32[1,2], index: 5, kind: input, shape index: {}]   ;;  %s1819_s6 = inlined_call_operand.vmem [shape: f32[1,2], index: 6, kind: input, shape index: {}]   ;;  %s1820_s7 = inlined_call_operand.hbm [shape: f32[1,1], index: 7, kind: output, shape index: {}]  }
   0x1   :  { %13 = vsyncpa [#allocation4], 0  ;;  %s1290_s24 = smov [#allocation2]   ;;  %s1242_s28 = scalar_lea.hbm %s1813_s0, 2816 }
   0x2   :  { %s19_s25 = sshll.u32 %s1290_s24, 4  ;;  %p1243_p0 = scmp.ne.s32.totalorder %s1813_s0, %s1242_s28  ;;  %s20_s25 = int_to_ptr.vmem [resolvable:$true] %s19_s25 }
   0x3   :  { %p1246_p1 = scmp.lt.u32.totalorder %s1242_s28, %s1813_s0 }
   0x5   :  { %p1248_p2 = pnand %p1246_p1, %p1243_p0 }
   0x7   :  { %1251 = shalt.err (!%p1248_p2)
}
   0x8   :  { %s1252_s10 = scalar_lea.vmem %s20_s25, 2816  ;;  %p1257_p4 = scmp.lt.s32.totalorder %s20_s25, %s20_s25 }
   0x9   :  { %p1253_p3 = scmp.ne.s32.totalorder %s20_s25, %s1252_s10  ;;  %p1258_p5 = scmp.lt.s32.totalorder %s1252_s10, %s1252_s10 }
   0xb   :  { %p1259_p6 = por %p1258_p5, %p1257_p4 }
   0xd   :  { %p1260_p7 = pnand %p1259_p6, %p1253_p3 }
   0xf   :  { %1263 = shalt.err (!%p1260_p7)
}
  0x10   :  { %s1291_s11 = smov 64   ;;  %s1292_s12 = smov 4  }
  0x11   :  { %25 = dma.hbm_to_vmem [thread:$0]  %s1813_s0, 2816, %s20_s25, [#allocation3], %s1291_s11, %s1291_s11, %s1292_s12  }
  0x12   :  { %1286 = dma.done.wait [#allocation3], 2816  }
  0x13   :  { %1287 = vsyncadd [#allocation3], 4294964480  ;;  %v1212_v0 = vld [vmem:[%s1814_s1] sm:$0xff]   ;;  %v1213_v1 = vld [vmem:[%s1814_s1 + $0x8] sm:$0xff]   ;;  %v1293_v32 = vmov 0.0|0.0   ;;  %vm1294_vm0 = vmmov 0   ;;  %v637_v39 = vlaneseq }
  0x14   :  { %1119 = vmatprep.subr.bf16.mxu0 %v1212_v0  ;;  %1189 = vmatprep.subr.bf16.mxu1 %v1212_v0  ;;  %v1214_v2 = vld [vmem:[%s1814_s1 + $0x10] sm:$0xff]   ;;  %v1215_v3 = vld [vmem:[%s1814_s1 + $0x18] sm:$0xff]   ;;  %v1220_v4 = vld [vmem:[#allocation2] sm:$0xff]   ;;  %v1295_v34 = vmov 0.0   ;;  %vm704_vm1 = vcmask 130048   ;;  %vm925_vm3 = vcmask 1040384  }
  0x15   :  { %1120 = vmatpush3.bf16.msra.mxu0 %v1212_v0  ;;  %1197 = vmatpush3.bf16.msra.mxu1 %v1212_v0  ;;  %v1216_v5 = vld [vmem:[%s1814_s1 + $0x20] sm:$0xff]   ;;  %v1217_v7 = vld [vmem:[%s1814_s1 + $0x28] sm:$0xff]   ;;  %v1218_v8 = vld [vmem:[%s1814_s1 + $0x30] sm:$0xff]   ;;  %v638_v55 = vshrl.u32 %v637_v39, 7  ;;  %vm927_vm4 = vcmask 1041408   ;;  %vm929_vm5 = vcmask 1042432  }
  0x16   :  { %1121 = vmatprep.subr.bf16.mxu0 %v1213_v1  ;;  %1190 = vmatprep.subr.bf16.mxu1 %v1213_v1  ;;  %v1224_v6 = vld [vmem:[#allocation2 + $0x60] sm:$0xff]   ;;  %v1219_v9 = vld [vmem:[%s1814_s1 + $0x38] sm:$0xff]   ;;  %v1221_v10 = vld [vmem:[#allocation2 + $0x8] sm:$0xff]   ;;  %vm1022_vm6 = vcmask 11264   ;;  %vm1026_vm7 = vcmask 1043456   ;;  %vm1034_vm8 = vcmask 0  }
  0x17   :  { %1135 = vmatprep.mubr.bf16.mxu0 %v1220_v4  ;;  %1159 = vmatprep.mubr.bf16.mxu1 %v1224_v6  ;;  %v1225_v11 = vld [vmem:[#allocation2 + $0x68] sm:$0xff]   ;;  %v1222_v12 = vld [vmem:[#allocation2 + $0x10] sm:$0xff]   ;;  %v1223_v14 = vld [vmem:[#allocation2 + $0x18] sm:$0xff]  }
  0x18   :  { %v1228_v13 = vld [vmem:[#allocation2 + $0x70] sm:$0xff]   ;;  %v1229_v15 = vld [vmem:[#allocation2 + $0x78] sm:$0xff]   ;;  %v1226_v16 = vld [vmem:[#allocation2 + $0x20] sm:$0xff]  }
  0x19   :  { %1122 = vmatpush3.bf16.msra.mxu0 %v1213_v1  ;;  %1198 = vmatpush3.bf16.msra.mxu1 %v1213_v1  ;;  %v1232_v17 = vld [vmem:[#allocation2 + $0x80] sm:$0xff]   ;;  %v1227_v18 = vld [vmem:[#allocation2 + $0x28] sm:$0xff]   ;;  %v1230_v20 = vld [vmem:[#allocation2 + $0x30] sm:$0xff]  }
  0x1a   :  { %1123 = vmatprep.subr.bf16.mxu0 %v1214_v2  ;;  %1191 = vmatprep.subr.bf16.mxu1 %v1214_v2  ;;  %v1233_v19 = vld [vmem:[#allocation2 + $0x88] sm:$0xff]   ;;  %v1236_v21 = vld [vmem:[#allocation2 + $0x90] sm:$0xff]   ;;  %v1231_v22 = vld [vmem:[#allocation2 + $0x38] sm:$0xff]  }
  0x1b   :  { %v1237_v23 = vld [vmem:[#allocation2 + $0x98] sm:$0xff]   ;;  %v1234_v24 = vld [vmem:[#allocation2 + $0x40] sm:$0xff]   ;;  %v1235_v26 = vld [vmem:[#allocation2 + $0x48] sm:$0xff]  }
  0x1c   :  { %v1240_v25 = vld [vmem:[#allocation2 + $0xa0] sm:$0xff]   ;;  %v1241_v27 = vld [vmem:[#allocation2 + $0xa8] sm:$0xff]   ;;  %v1238_v28 = vld [vmem:[#allocation2 + $0x50] sm:$0xff]  }
  0x1d   :  { %1124 = vmatpush3.bf16.msra.mxu0 %v1214_v2  ;;  %1199 = vmatpush3.bf16.msra.mxu1 %v1214_v2  ;;  %v1239_v29 = vld [vmem:[#allocation2 + $0x58] sm:$0xff]   ;;  %v931_v30 = vld [vmem:[%s1817_s4] sm:$0xff]  ;;  %v932_v31 = vld [vmem:[%s1817_s4 + $0x8] sm:$0xff] }
  0x1e   :  { %1125 = vmatprep.subr.bf16.mxu0 %v1215_v3  ;;  %1192 = vmatprep.subr.bf16.mxu1 %v1215_v3  ;;  %v1187_v33 = vpack.c.bf16 %v932_v31, %v931_v30  ;;  %v1382_v35 = vld [vmem:[%s1815_s2] ss:$0 sm:$0xff] }
  0x1f   :  { %v1387_v37 = vld [vmem:[%s1816_s3] ss:$0 sm:$0xff] }
  0x21   :  { %1126 = vmatpush3.bf16.msra.mxu0 %v1215_v3  ;;  %1200 = vmatpush3.bf16.msra.mxu1 %v1215_v3  ;;  %v1407_v3 = vadd.s32 168, %v638_v55 }
  0x22   :  { %1127 = vmatprep.subr.bf16.mxu0 %v1216_v5  ;;  %1193 = vmatprep.subr.bf16.mxu1 %v1216_v5 }
  0x23   :  { %vm681_vm2 = vcmp.lt.s32.totalorder %v1407_v3, 169 }
  0x25   :  { %1128 = vmatpush3.bf16.msra.mxu0 %v1216_v5  ;;  %1201 = vmatpush3.bf16.msra.mxu1 %v1216_v5 }
  0x26   :  { %1129 = vmatprep.subr.bf16.mxu0 %v1217_v7  ;;  %1194 = vmatprep.subr.bf16.mxu1 %v1217_v7 }
  0x29   :  { %1130 = vmatpush3.bf16.msra.mxu0 %v1217_v7  ;;  %1202 = vmatpush3.bf16.msra.mxu1 %v1217_v7 }
  0x2a   :  { %1131 = vmatprep.subr.bf16.mxu0 %v1218_v8  ;;  %1195 = vmatprep.subr.bf16.mxu1 %v1218_v8 }
  0x2d   :  { %1132 = vmatpush3.bf16.msra.mxu0 %v1218_v8  ;;  %1203 = vmatpush3.bf16.msra.mxu1 %v1218_v8 }
  0x2e   :  { %1133 = vmatprep.subr.bf16.mxu0 %v1219_v9  ;;  %1196 = vmatprep.subr.bf16.mxu1 %v1219_v9 }
  0x31   :  { %1134 = vmatpush3.bf16.msra.mxu0 %v1219_v9  ;;  %1204 = vmatpush3.bf16.msra.mxu1 %v1219_v9 }
  0x32   :  { %1186 = vmatprep.subr.bf16.mxu1 %v1293_v32 }
  0x34   :  { %1136 = vmatmul.mubr.bf16.vlgmr.msra.gmra.mrb[0].mxu0 %v1221_v10  ;;  %1160 = vmatmul.mubr.bf16.vlgmr.msra.gmra.mrb[0].mxu1 %v1225_v11 }
  0x35   :  { %1139 = vmatprep.mubr.bf16.mxu0 %v1222_v12  ;;  %1163 = vmatprep.mubr.bf16.mxu1 %v1228_v13 }
  0x36   :  { %1188 = vmatpush3.bf16.msra.mxu1 %v1187_v33 }
  0x3c   :  { %1140 = vmatmul.mubr.bf16.gmra.mrb[4].mxu0 %v1223_v14  ;;  %1164 = vmatmul.mubr.bf16.gmra.mrb[4].mxu1 %v1229_v15 }
  0x3d   :  { %1143 = vmatprep.mubr.bf16.mxu0 %v1226_v16  ;;  %1167 = vmatprep.mubr.bf16.mxu1 %v1232_v17 }
  0x44   :  { %1144 = vmatmul.mubr.bf16.gmra.mrb[8].mxu0 %v1227_v18  ;;  %1168 = vmatmul.mubr.bf16.gmra.mrb[8].mxu1 %v1233_v19 }
  0x45   :  { %1147 = vmatprep.mubr.bf16.mxu0 %v1230_v20  ;;  %1171 = vmatprep.mubr.bf16.mxu1 %v1236_v21 }
  0x4c   :  { %1148 = vmatmul.mubr.bf16.gmra.mrb[12].mxu0 %v1231_v22  ;;  %1172 = vmatmul.mubr.bf16.gmra.mrb[12].mxu1 %v1237_v23 }
  0x4d   :  { %1151 = vmatprep.mubr.bf16.mxu0 %v1234_v24  ;;  %1175 = vmatprep.mubr.bf16.mxu1 %v1240_v25 }
  0x54   :  { %1152 = vmatmul.mubr.bf16.gmra.mrb[16].mxu0 %v1235_v26  ;;  %1176 = vmatmul.mubr.bf16.gmra.mrb[16].mxu1 %v1241_v27 }
  0x55   :  { %1155 = vmatprep.mubr.bf16.mxu0 %v1238_v28  ;;  %1183 = vmatprep.mubr.msk.f32.mxu1 %vm1294_vm0, %v1295_v34 }
  0x5c   :  { %1156 = vmatmul.mubr.bf16.gmra.mrb[20].mxu0 %v1239_v29 }
 0x107   :  { %v1137_v36 = vpop.f32.mrb[0].mxu0  ;;  %v1161_v38 = vpop.f32.mrb[0].mxu1 }
 0x108   :  { %v500_v40 = vmul.f32 %v1137_v36, %v1382_v35  ;;  %v316_v41 = vpop.f32.mrb[1].mxu0  ;;  %v524_v42 = vmul.f32 %v1161_v38, %v1382_v35  ;;  %v412_v43 = vpop.f32.mrb[1].mxu1 }
 0x109   :  { %v498_v44 = vmul.f32 %v1382_v35, %v316_v41  ;;  %v1138_v45 = vpop.f32.mrb[2].mxu0  ;;  %v522_v46 = vmul.f32 %v1382_v35, %v412_v43  ;;  %v1162_v47 = vpop.f32.mrb[2].mxu1 }
 0x10a   :  { %v551_v48 = vadd.f32 %v1387_v37, %v500_v40  ;;  %v501_v49 = vmul.f32 %v1138_v45, %v1382_v35  ;;  %v319_v50 = vpop.f32.mrb[3].mxu0  ;;  %v415_v51 = vpop.f32.mrb[3].mxu1  ;;  %v575_v54 = vadd.f32 %v1387_v37, %v524_v42  ;;  %v525_v57 = vmul.f32 %v1162_v47, %v1382_v35 }
 0x10b   :  { %v549_v52 = vadd.f32 %v1387_v37, %v498_v44  ;;  %v499_v53 = vmul.f32 %v1382_v35, %v319_v50  ;;  %v1399_v56 = vadd.f32 %v1387_v37, %v522_v46  ;;  %v523_v58 = vmul.f32 %v1382_v35, %v415_v51 }
 0x10c   :  { %v552_v60 = vadd.f32 %v1387_v37, %v501_v49  ;;  %v595_v62 = vmax.f32 %v551_v48, 0.0  ;;  %v619_v1 = vmax.f32 %v575_v54, 0.0  ;;  %v1412_v7 = vadd.f32 %v1387_v37, %v525_v57 }
 0x10d   :  { %v593_v59 = vmax.f32 %v549_v52, 0.0  ;;  %v550_v61 = vadd.f32 %v1387_v37, %v499_v53  ;;  %v617_v6 = vmax.f32 %v1399_v56, 0.0  ;;  %v1415_v8 = vadd.f32 %v1387_v37, %v523_v58 }
 0x10e   :  { %v596_v11 = vmax.f32 %v552_v60, 0.0  ;;  %v708_v16 = vsel %vm704_vm1, %v595_v62, 0.0  ;;  %v1428_v22 = vsel %vm704_vm1, %v595_v62, -inf  ;;  %v1433_v25 = vsel %vm704_vm1, %v619_v1, 0.0 }
 0x10f   :  { %v594_v63 = vmax.f32 %v550_v61, 0.0  ;;  %v1141_v0 = vpop.f32.mrb[4].mxu0  ;;  %v1405_v2 = vpop.f32.mrb[4].mxu1  ;;  %v705_v10 = vsel %vm704_vm1, %v593_v59, 0.0  ;;  %v1436_v26 = vsel %vm704_vm1, %v593_v59, -inf  ;;  %v1442_v33 = vsel %vm704_vm1, %v619_v1, -inf }
 0x110   :  { %v504_v4 = vmul.f32 %v1141_v0, %v1382_v35  ;;  %v332_v5 = vpop.f32.mrb[5].mxu0  ;;  %v428_v9 = vpop.f32.mrb[5].mxu1  ;;  %v710_v30 = vsel %vm704_vm1, %v596_v11, 0.0  ;;  %v1445_v34 = vsel %vm704_vm1, %v596_v11, -inf }
 0x111   :  { %v706_v12 = vsel %vm704_vm1, %v594_v63, 0.0  ;;  %v502_v13 = vmul.f32 %v1382_v35, %v332_v5  ;;  %v1142_v14 = vpop.f32.mrb[6].mxu0  ;;  %v1420_v15 = vpop.f32.mrb[6].mxu1  ;;  %v756_v46 = vsel %vm704_vm1, %v594_v63, -inf }
 0x112   :  { %v707_v17 = vadd.f32 %v706_v12, %v705_v10  ;;  %v555_v18 = vadd.f32 %v1387_v37, %v504_v4  ;;  %v505_v19 = vmul.f32 %v1142_v14, %v1382_v35  ;;  %v335_v20 = vpop.f32.mrb[7].mxu0  ;;  %v1425_v21 = vpop.f32.mrb[7].mxu1  ;;  %v1474_v10 = vsel %vm704_vm1, %v617_v6, 0.0 }
 0x113   :  { %v553_v23 = vadd.f32 %v1387_v37, %v502_v13  ;;  %v503_v24 = vmul.f32 %v1382_v35, %v335_v20  ;;  %v526_v14 = vmul.f32 %v1382_v35, %v428_v9  ;;  %v618_v9 = vmax.f32 %v1415_v8, 0.0 }
 0x114   :  { %v709_v27 = vadd.f32 %v708_v16, %v707_v17  ;;  %v599_v28 = vmax.f32 %v555_v18, 0.0  ;;  %v556_v29 = vadd.f32 %v1387_v37, %v505_v19  ;;  %v1484_v19 = vsel %vm704_vm1, %v617_v6, -inf }
 0x115   :  { %v597_v31 = vmax.f32 %v553_v23, 0.0  ;;  %v554_v32 = vadd.f32 %v1387_v37, %v503_v24  ;;  %v620_v24 = vmax.f32 %v1412_v7, 0.0 }
 0x116   :  { %v763_v36 = vsel %vm704_vm1, %v599_v28, -inf  ;;  %v711_v38 = vadd.f32 %v710_v30, %v709_v27  ;;  %v600_v39 = vmax.f32 %v556_v29, 0.0  ;;  %v716_v1 = vsel %vm704_vm1, %v599_v28, 0.0 }
 0x117   :  { %v764_v40 = vmax.f32 %v1428_v22, %v763_v36  ;;  %v712_v41 = vsel %vm704_vm1, %v597_v31, 0.0  ;;  %v759_v42 = vsel %vm704_vm1, %v597_v31, -inf  ;;  %v598_v43 = vmax.f32 %v554_v32, 0.0  ;;  %v1145_v44 = vpop.f32.mrb[8].mxu0  ;;  %v1451_v45 = vpop.f32.mrb[8].mxu1 }
 0x118   :  { %v713_v47 = vadd.f32 %v712_v41, %v711_v38  ;;  %v760_v48 = vmax.f32 %v1436_v26, %v759_v42  ;;  %v765_v49 = vsel %vm704_vm1, %v600_v39, -inf  ;;  %v348_v50 = vpop.f32.mrb[9].mxu0  ;;  %v1456_v51 = vpop.f32.mrb[9].mxu1  ;;  %v508_v55 = vmul.f32 %v1145_v44, %v1382_v35 }
 0x119   :  { %v766_v52 = vmax.f32 %v1445_v34, %v765_v49  ;;  %v714_v53 = vsel %vm704_vm1, %v598_v43, 0.0  ;;  %v761_v54 = vsel %vm704_vm1, %v598_v43, -inf  ;;  %v1146_v57 = vpop.f32.mrb[10].mxu0  ;;  %v1462_v58 = vpop.f32.mrb[10].mxu1  ;;  %v506_v61 = vmul.f32 %v1382_v35, %v348_v50 }
 0x11a   :  { %v715_v59 = vadd.f32 %v714_v53, %v713_v47  ;;  %v762_v60 = vmax.f32 %v756_v46, %v761_v54  ;;  %v509_v62 = vmul.f32 %v1146_v57, %v1382_v35  ;;  %v351_v63 = vpop.f32.mrb[11].mxu0  ;;  %v1466_v0 = vpop.f32.mrb[11].mxu1  ;;  %v559_v4 = vadd.f32 %v1387_v37, %v508_v55 }
 0x11b   :  { %v507_v5 = vmul.f32 %v1382_v35, %v351_v63  ;;  %v557_v12 = vadd.f32 %v1387_v37, %v506_v61  ;;  %v718_v16 = vsel %vm704_vm1, %v600_v39, 0.0  ;;  %v528_v29 = vmul.f32 %v1405_v2, %v1382_v35 }
 0x11c   :  { %v717_v11 = vadd.f32 %v716_v1, %v715_v59  ;;  %v560_v13 = vadd.f32 %v1387_v37, %v509_v62  ;;  %v603_v17 = vmax.f32 %v559_v4, 0.0  ;;  %v1498_v34 = vadd.f32 %v1387_v37, %v526_v14 }
 0x11d   :  { %v558_v18 = vadd.f32 %v1387_v37, %v507_v5  ;;  %v601_v20 = vmax.f32 %v557_v12, 0.0 }
 0x11e   :  { %v719_v22 = vadd.f32 %v718_v16, %v717_v11  ;;  %v604_v23 = vmax.f32 %v560_v13, 0.0  ;;  %v771_v26 = vsel %vm704_vm1, %v603_v17, -inf  ;;  %v724_v57 = vsel %vm704_vm1, %v603_v17, 0.0 }
 0x11f   :  { %v602_v27 = vmax.f32 %v558_v18, 0.0  ;;  %v1149_v28 = vpop.f32.mrb[12].mxu0  ;;  %v1491_v30 = vpop.f32.mrb[12].mxu1  ;;  %v1493_v56 = vmax.f32 %v764_v40, %v771_v26  ;;  %v720_v6 = vsel %vm704_vm1, %v601_v20, 0.0  ;;  %v767_v31 = vsel %vm704_vm1, %v601_v20, -inf }
 0x120   :  { %v364_v32 = vpop.f32.mrb[13].mxu0  ;;  %v1500_v36 = vpop.f32.mrb[13].mxu1  ;;  %v721_v38 = vadd.f32 %v720_v6, %v719_v22  ;;  %v1502_v39 = vmax.f32 %v760_v48, %v767_v31  ;;  %v773_v41 = vsel %vm704_vm1, %v604_v23, -inf  ;;  %v512_v46 = vmul.f32 %v1149_v28, %v1382_v35 }
 0x121   :  { %v722_v2 = vsel %vm704_vm1, %v602_v27, 0.0  ;;  %v1150_v42 = vpop.f32.mrb[14].mxu0  ;;  %v1506_v40 = vpop.f32.mrb[14].mxu1  ;;  %v1508_v43 = vmax.f32 %v766_v52, %v773_v41  ;;  %v769_v44 = vsel %vm704_vm1, %v602_v27, -inf  ;;  %v510_v47 = vmul.f32 %v1382_v35, %v364_v32 }
 0x122   :  { %v367_v49 = vpop.f32.mrb[15].mxu0  ;;  %v1513_v50 = vpop.f32.mrb[15].mxu1  ;;  %v723_v48 = vadd.f32 %v722_v2, %v721_v38  ;;  %v1515_v53 = vmax.f32 %v762_v60, %v769_v44  ;;  %v513_v54 = vmul.f32 %v1150_v42, %v1382_v35  ;;  %v563_v52 = vadd.f32 %v1387_v37, %v512_v46 }
 0x123   :  { %v511_v55 = vmul.f32 %v1382_v35, %v367_v49  ;;  %v561_v59 = vadd.f32 %v1387_v37, %v510_v47  ;;  %v621_v61 = vmax.f32 %v1498_v34, 0.0  ;;  %v1528_v60 = vsel %vm704_vm1, %v620_v24, -inf }
 0x124   :  { %v725_v62 = vadd.f32 %v724_v57, %v723_v48  ;;  %v564_v63 = vadd.f32 %v1387_v37, %v513_v54  ;;  %v726_v4 = vsel %vm704_vm1, %v604_v23, 0.0  ;;  %v607_v5 = vmax.f32 %v563_v52, 0.0 }
 0x125   :  { %v562_v1 = vadd.f32 %v1387_v37, %v511_v55  ;;  %v605_v11 = vmax.f32 %v561_v59, 0.0  ;;  %v1534_v12 = vsel %vm704_vm1, %v621_v61, -inf  ;;  %v1546_v28 = vsel %vm704_vm1, %v618_v9, -inf }
 0x126   :  { %v727_v13 = vadd.f32 %v726_v4, %v725_v62  ;;  %v608_v14 = vmax.f32 %v564_v63, 0.0  ;;  %v885_v18 = vmax.f32 %v1484_v19, %v1534_v12  ;;  %v779_v22 = vsel %vm704_vm1, %v607_v5, -inf }
 0x127   :  { %v606_v16 = vmax.f32 %v562_v1, 0.0  ;;  %v1153_v17 = vpop.f32.mrb[16].mxu0  ;;  %v1538_v20 = vpop.f32.mrb[16].mxu1  ;;  %v728_v23 = vsel %vm704_vm1, %v605_v11, 0.0  ;;  %v775_v26 = vsel %vm704_vm1, %v605_v11, -inf  ;;  %v780_v31 = vmax.f32 %v1493_v56, %v779_v22 }
 0x128   :  { %v380_v27 = vpop.f32.mrb[17].mxu0  ;;  %v1548_v6 = vpop.f32.mrb[17].mxu1  ;;  %v729_v32 = vadd.f32 %v728_v23, %v727_v13  ;;  %v776_v38 = vmax.f32 %v1502_v39, %v775_v26  ;;  %v1553_v2 = vadd.f32 %v1387_v37, %v528_v29  ;;  %v781_v44 = vsel %vm704_vm1, %v608_v14, -inf }
 0x129   :  { %v1154_v41 = vpop.f32.mrb[18].mxu0  ;;  %v1555_v42 = vpop.f32.mrb[18].mxu1  ;;  %v730_v46 = vsel %vm704_vm1, %v606_v16, 0.0  ;;  %v777_v47 = vsel %vm704_vm1, %v606_v16, -inf  ;;  %v516_v49 = vmul.f32 %v1153_v17, %v1382_v35  ;;  %v782_v56 = vmax.f32 %v1508_v43, %v781_v44 }
 0x12a   :  { %v383_v48 = vpop.f32.mrb[19].mxu0  ;;  %v1561_v54 = vpop.f32.mrb[19].mxu1  ;;  %v731_v39 = vadd.f32 %v730_v46, %v729_v32  ;;  %v778_v55 = vmax.f32 %v1515_v53, %v777_v47  ;;  %v514_v29 = vmul.f32 %v1382_v35, %v380_v27  ;;  %v732_v57 = vsel %vm704_vm1, %v607_v5, 0.0 }
 0x12b   :  { %v567_v52 = vadd.f32 %v1387_v37, %v516_v49  ;;  %v517_v59 = vmul.f32 %v1154_v41, %v1382_v35  ;;  %v515_v62 = vmul.f32 %v1382_v35, %v383_v48  ;;  %v529_v4 = vmul.f32 %v1420_v15, %v1382_v35 }
 0x12c   :  { %v733_v63 = vadd.f32 %v732_v57, %v731_v39  ;;  %v565_v1 = vadd.f32 %v1387_v37, %v514_v29  ;;  %v527_v43 = vmul.f32 %v1382_v35, %v1425_v21  ;;  %v734_v53 = vsel %vm704_vm1, %v608_v14, 0.0 }
 0x12d   :  { %v611_v11 = vmax.f32 %v567_v52, 0.0  ;;  %v568_v5 = vadd.f32 %v1387_v37, %v517_v59  ;;  %v566_v13 = vadd.f32 %v1387_v37, %v515_v62  ;;  %v623_v22 = vmax.f32 %v1553_v2, 0.0 }
 0x12e   :  { %v609_v16 = vmax.f32 %v565_v1, 0.0  ;;  %v735_v17 = vadd.f32 %v734_v53, %v733_v63  ;;  %v1580_v23 = vadd.f32 %v1387_v37, %v527_v43  ;;  %v532_v21 = vmul.f32 %v1451_v45, %v1382_v35 }
 0x12f   :  { %v1157_v26 = vpop.f32.mrb[20].mxu0  ;;  %v787_v15 = vsel %vm704_vm1, %v611_v11, -inf  ;;  %v612_v27 = vmax.f32 %v568_v5, 0.0  ;;  %v610_v32 = vmax.f32 %v566_v13, 0.0  ;;  %v1594_v57 = vadd.f32 %v1387_v37, %v529_v4 }
 0x130   :  { %v396_v14 = vpop.f32.mrb[21].mxu0  ;;  %v1585_v41 = vmax.f32 %v780_v31, %v787_v15  ;;  %v736_v44 = vsel %vm704_vm1, %v609_v16, 0.0  ;;  %v783_v46 = vsel %vm704_vm1, %v609_v16, -inf  ;;  %v622_v47 = vmax.f32 %v1580_v23, 0.0 }
 0x131   :  { %v1158_v49 = vpop.f32.mrb[22].mxu0  ;;  %v737_v48 = vadd.f32 %v736_v44, %v735_v17  ;;  %v1590_v39 = vmax.f32 %v776_v38, %v783_v46  ;;  %v789_v29 = vsel %vm704_vm1, %v612_v27, -inf  ;;  %v740_v45 = vsel %vm704_vm1, %v611_v11, 0.0 }
 0x132   :  { %v399_v52 = vpop.f32.mrb[23].mxu0  ;;  %v1597_v31 = vmax.f32 %v782_v56, %v789_v29  ;;  %v738_v59 = vsel %vm704_vm1, %v610_v32, 0.0  ;;  %v785_v62 = vsel %vm704_vm1, %v610_v32, -inf  ;;  %v886_v38 = vsel %vm704_vm1, %v622_v47, -inf }
 0x133   :  { %v739_v63 = vadd.f32 %v738_v59, %v737_v48  ;;  %v1601_v1 = vmax.f32 %v778_v55, %v785_v62  ;;  %v1607_v43 = vadd.f32 %v1387_v37, %v532_v21  ;;  %v887_v56 = vmax.f32 %v1546_v28, %v886_v38 }
 0x134   :  { %v796_v4 = vmax.f32 %v1585_v41, %v1597_v31  ;;  %v530_v53 = vmul.f32 %v1382_v35, %v1456_v51  ;;  %v520_v11 = vmul.f32 %v1157_v26, %v1382_v35  ;;  %v624_v55 = vmax.f32 %v1594_v57, 0.0 }
 0x135   :  { %v741_v5 = vadd.f32 %v740_v45, %v739_v63  ;;  %v533_v13 = vmul.f32 %v1462_v58, %v1382_v35  ;;  %v518_v16 = vmul.f32 %v1382_v35, %v396_v14  ;;  %v531_v28 = vmul.f32 %v1382_v35, %v1466_v0 }
 0x136   :  { %v1620_v17 = vadd.f32 %v1387_v37, %v530_v53  ;;  %v571_v15 = vadd.f32 %v1387_v37, %v520_v11  ;;  %v521_v51 = vmul.f32 %v1158_v49, %v1382_v35  ;;  %v742_v26 = vsel %vm704_vm1, %v612_v27, 0.0 }
 0x137   :  { %v627_v32 = vmax.f32 %v1607_v43, 0.0  ;;  %v1629_v21 = vadd.f32 %v1387_v37, %v533_v13  ;;  %v569_v58 = vadd.f32 %v1387_v37, %v518_v16  ;;  %v743_v46 = vadd.f32 %v742_v26, %v741_v5 }
 0x138   :  { %v625_v14 = vmax.f32 %v1620_v17, 0.0  ;;  %v615_v44 = vmax.f32 %v571_v15, 0.0  ;;  %v1634_v48 = vadd.f32 %v1387_v37, %v531_v28  ;;  %v888_v0 = vsel %vm704_vm1, %v623_v22, -inf }
 0x139   :  { %v613_v49 = vmax.f32 %v569_v58, 0.0  ;;  %v572_v27 = vadd.f32 %v1387_v37, %v521_v51  ;;  %v536_v29 = vmul.f32 %v1491_v30, %v1382_v35  ;;  %v890_v45 = vsel %vm704_vm1, %v624_v55, -inf }
 0x13a   :  { %v892_v59 = vsel %vm704_vm1, %v625_v14, -inf  ;;  %v876_v62 = vsel %vm704_vm1, %v615_v44, -inf  ;;  %v628_v63 = vmax.f32 %v1629_v21, 0.0  ;;  %v896_v38 = vsel %vm704_vm1, %v627_v32, -inf }
 0x13b   :  { %v1656_v30 = vmax.f32 %v885_v18, %v892_v59  ;;  %v826_v53 = vsel %vm704_vm1, %v615_v44, 0.0  ;;  %v881_v11 = vmax.f32 %v876_v62, %v1442_v33  ;;  %v744_v5 = vsel %vm704_vm1, %v613_v49, 0.0 }
 0x13c   :  { %v791_v13 = vsel %vm704_vm1, %v613_v49, -inf  ;;  %v626_v16 = vmax.f32 %v1634_v48, 0.0  ;;  %v616_v15 = vmax.f32 %v572_v27, 0.0  ;;  %v745_v51 = vadd.f32 %v744_v5, %v743_v46 }
 0x13d   :  { %v889_v28 = vmax.f32 %v881_v11, %v888_v0  ;;  %v792_v26 = vmax.f32 %v1590_v39, %v791_v13  ;;  %v1666_v19 = vadd.f32 %v1387_v37, %v536_v29  ;;  %v898_v33 = vsel %vm704_vm1, %v628_v63, -inf }
 0x13e   :  { %v894_v12 = vsel %vm704_vm1, %v626_v16, -inf  ;;  %v827_v18 = vsel %vm704_vm1, %v616_v15, 0.0  ;;  %v877_v58 = vsel %vm704_vm1, %v616_v15, -inf  ;;  %v519_v27 = vmul.f32 %v1382_v35, %v399_v52 }
 0x13f   :  { %v1676_v44 = vmax.f32 %v887_v56, %v894_v12  ;;  %v828_v46 = vadd.f32 %v827_v18, %v826_v53  ;;  %v883_v39 = vmax.f32 %v877_v58, %v1528_v60  ;;  %v631_v0 = vmax.f32 %v1666_v19, 0.0 }
 0x140   :  { %v897_v49 = vmax.f32 %v889_v28, %v896_v38  ;;  %v534_v29 = vmul.f32 %v1382_v35, %v1500_v36  ;;  %v537_v59 = vmul.f32 %v1506_v40, %v1382_v35  ;;  %v831_v62 = vsel %vm704_vm1, %v618_v9, 0.0 }
 0x141   :  { %v830_v56 = vadd.f32 %v1474_v10, %v828_v46  ;;  %v891_v53 = vmax.f32 %v883_v39, %v890_v45  ;;  %v904_v60 = vsel %vm704_vm1, %v631_v0, -inf  ;;  %v570_v52 = vadd.f32 %v1387_v37, %v519_v27 }
 0x142   :  { %v1692_v38 = vmax.f32 %v897_v49, %v904_v60  ;;  %v1696_v36 = vadd.f32 %v1387_v37, %v534_v29  ;;  %v1699_v40 = vadd.f32 %v1387_v37, %v537_v59  ;;  %v535_v10 = vmul.f32 %v1382_v35, %v1513_v50 }
 0x143   :  { %v832_v8 = vadd.f32 %v831_v62, %v830_v56  ;;  %v899_v11 = vmax.f32 %v891_v53, %v898_v33  ;;  %v540_v9 = vmul.f32 %v1538_v20, %v1382_v35  ;;  %v835_v45 = vsel %vm704_vm1, %v620_v24, 0.0 }
 0x144   :  { %v614_v5 = vmax.f32 %v570_v52, 0.0  ;;  %v629_v13 = vmax.f32 %v1696_v36, 0.0  ;;  %v632_v15 = vmax.f32 %v1699_v40, 0.0  ;;  %v1712_v12 = vadd.f32 %v1387_v37, %v535_v10 }
 0x145   :  { %v834_v28 = vadd.f32 %v1433_v25, %v832_v8  ;;  %v1715_v33 = vadd.f32 %v1387_v37, %v540_v9  ;;  %v538_v50 = vmul.f32 %v1382_v35, %v1548_v6  ;;  %v837_v7 = vsel %vm704_vm1, %v621_v61, 0.0 }
 0x146   :  { %v703_v24 = vsel %vm681_vm2, %v614_v5, 0.0  ;;  %v900_v25 = vsel %vm704_vm1, %v629_v13, -inf  ;;  %v541_v20 = vmul.f32 %v1555_v42, %v1382_v35  ;;  %v906_v39 = vsel %vm704_vm1, %v632_v15, -inf }
 0x147   :  { %v836_v18 = vadd.f32 %v835_v45, %v834_v28  ;;  %v746_v58 = vsel %vm704_vm1, %v703_v24, 0.0  ;;  %v793_v46 = vsel %vm704_vm1, %v703_v24, -inf  ;;  %v901_v6 = vmax.f32 %v1656_v30, %v900_v25 }
 0x148   :  { %v747_v34 = vadd.f32 %v746_v58, %v745_v51  ;;  %v794_v61 = vmax.f32 %v1601_v1, %v793_v46  ;;  %v630_v49 = vmax.f32 %v1712_v12, 0.0  ;;  %v907_v29 = vmax.f32 %v899_v11, %v906_v39 }
 0x149   :  { %v838_v27 = vadd.f32 %v837_v7, %v836_v18  ;;  %v635_v42 = vmax.f32 %v1715_v33, 0.0  ;;  %v589_v59 = vadd.f32 %v1387_v37, %v538_v50  ;;  %v839_v62 = vsel %vm704_vm1, %v622_v47, 0.0 }
 0x14a   :  { %v748_v30 = vrot.slane %v747_v34, 4  ;;  %v795_v51 = vmax.f32 %v792_v26, %v794_v61  ;;  %v902_v1 = vsel %vm704_vm1, %v630_v49, -inf  ;;  %v841_v56 = vsel %vm704_vm1, %v623_v22, 0.0 }
 0x14b   :  { %v840_v53 = vadd.f32 %v839_v62, %v838_v27  ;;  %v903_v60 = vmax.f32 %v1676_v44, %v902_v1  ;;  %v912_v52 = vsel %vm704_vm1, %v635_v42, -inf  ;;  %v633_v26 = vmax.f32 %v589_v59, 0.0 }
 0x14c   :  { %v749_v8 = vadd.f32 %v748_v30, %v747_v34  ;;  %v797_v23 = vmax.f32 %v795_v51, %v796_v4  ;;  %v913_v47 = vmax.f32 %v1692_v38, %v912_v52  ;;  %v843_v2 = vsel %vm704_vm1, %v624_v55, 0.0 }
 0x14d   :  { %v842_v22 = vadd.f32 %v841_v56, %v840_v53  ;;  %v592_v11 = vadd.f32 %v1387_v37, %v541_v20  ;;  %v539_v44 = vmul.f32 %v1382_v35, %v1561_v54  ;;  %v845_v10 = vsel %vm704_vm1, %v625_v14, 0.0 }
 0x14e   :  { %v750_v9 = vrot.slane %v749_v8, 2  ;;  %v798_v41 = vrot.slane %v797_v23, 4  ;;  %v908_v31 = vsel %vm704_vm1, %v633_v26, -inf  ;;  %v847_v54 = vsel %vm704_vm1, %v626_v16, 0.0 }
 0x14f   :  { %v844_v4 = vadd.f32 %v843_v2, %v842_v22  ;;  %v909_v38 = vmax.f32 %v901_v6, %v908_v31  ;;  %v636_v45 = vmax.f32 %v592_v11, 0.0  ;;  %v590_v57 = vadd.f32 %v1387_v37, %v539_v44 }
 0x150   :  { %v751_v55 = vadd.f32 %v750_v9, %v749_v8  ;;  %v799_v5 = vmax.f32 %v797_v23, %v798_v41  ;;  %v849_v37 = vsel %vm704_vm1, %v627_v32, 0.0  ;;  %v851_v48 = vsel %vm704_vm1, %v628_v63, 0.0  ;;  %v1083_v9 = vld [vmem:[%s1818_s5] ss:$0 sm:$0xff]  ;;  %s1296_s5 = smov [#allocation5]  }
 0x151   :  { %v846_v28 = vadd.f32 %v845_v10, %v844_v4  ;;  %v825_v12 = vsel %vm681_vm2, %v636_v45, 0.0  ;;  %v634_v35 = vmax.f32 %v590_v57, 0.0  ;;  %v853_v6 = vsel %vm704_vm1, %v629_v13, 0.0  ;;  %s1042_s15 = sshll.u32 %s1296_s5, 4  ;;  %s1043_s15 = int_to_ptr.vmem [resolvable:$true] %s1042_s15 }
 0x152   :  { %v752_v17 = vrot.slane %v751_v55, 1  ;;  %v800_v14 = vrot.slane %v799_v5, 2  ;;  %v914_v50 = vsel %vm704_vm1, %v825_v12, -inf  ;;  %v857_v21 = vsel %vm704_vm1, %v631_v0, 0.0  ;;  %s1268_s16 = scalar_lea.vmem %s1043_s15, 32  ;;  %p1269_p9 = scmp.lt.s32.totalorder %s1043_s15, %s1043_s15 }
 0x153   :  { %v848_v7 = vadd.f32 %v847_v54, %v846_v28  ;;  %v915_v24 = vmax.f32 %v907_v29, %v914_v50  ;;  %v910_v25 = vsel %vm704_vm1, %v634_v35, -inf  ;;  %v855_v29 = vsel %vm704_vm1, %v630_v49, 0.0 }
 0x154   :  { %v753_v20 = vadd.f32 %v752_v17, %v751_v55  ;;  %v801_v3 = vmax.f32 %v799_v5, %v800_v14  ;;  %v911_v18 = vmax.f32 %v903_v60, %v910_v25  ;;  %v859_v36 = vsel %vm704_vm1, %v632_v15, 0.0 }
 0x155   :  { %v850_v58 = vadd.f32 %v849_v37, %v848_v7  ;;  %v916_v46 = vmax.f32 %v913_v47, %v915_v24  ;;  %v861_v13 = vsel %vm704_vm1, %v633_v26, 0.0  ;;  %v863_v1 = vsel %vm704_vm1, %v634_v35, 0.0 }
 0x156   :  { %v802_v16 = vrot.slane %v801_v3, 1  ;;  %v917_v34 = vmax.f32 %v909_v38, %v911_v18  ;;  %v754_v43 = vmul.f32 0.00591716, %v753_v20  ;;  %v865_v49 = vsel %vm704_vm1, %v635_v42, 0.0  ;;  %v1085_v38 = vld [vmem:[%s1819_s6] ss:$0 sm:$0xff] }
 0x157   :  { %v852_v61 = vadd.f32 %v851_v48, %v850_v58  ;;  %v867_v0 = vsel %vm704_vm1, %v825_v12, 0.0  ;;  %s1264_s6 = scalar_lea.vmem %s1043_s15, 16 }
 0x158   :  { %v803_v39 = vmax.f32 %v801_v3, %v802_v16  ;;  %v918_v32 = vmax.f32 %v916_v46, %v917_v34  ;;  %p1265_p8 = scmp.ne.s32.totalorder %s1043_s15, %s1264_s6  ;;  %p1270_p10 = scmp.lt.s32.totalorder %s1268_s16, %s1264_s6 }
 0x159   :  { %v854_v27 = vadd.f32 %v853_v6, %v852_v61 }
 0x15a   :  { %v926_v59 = vsel %vm925_vm3, %v754_v43, %v803_v39  ;;  %v919_v56 = vrot.slane %v918_v32, 4  ;;  %p1271_p11 = por %p1270_p10, %p1269_p9 }
 0x15b   :  { %v856_v62 = vadd.f32 %v855_v29, %v854_v27 }
 0x15c   :  { %v920_v60 = vmax.f32 %v918_v32, %v919_v56  ;;  %p1272_p12 = pnand %p1271_p11, %p1265_p8 }
 0x15d   :  { %v858_v63 = vadd.f32 %v857_v21, %v856_v62 }
 0x15e   :  { %v921_v8 = vrot.slane %v920_v60, 2 }
 0x15f   :  { %v860_v30 = vadd.f32 %v859_v36, %v858_v63 }
 0x160   :  { %v922_v47 = vmax.f32 %v920_v60, %v921_v8 }
 0x161   :  { %v862_v51 = vadd.f32 %v861_v13, %v860_v30 }
 0x162   :  { %v923_v22 = vrot.slane %v922_v47, 1 }
 0x163   :  { %v864_v53 = vadd.f32 %v863_v1, %v862_v51 }
 0x164   :  { %v924_v33 = vmax.f32 %v922_v47, %v923_v22 }
 0x165   :  { %v866_v19 = vadd.f32 %v865_v49, %v864_v53 }
 0x167   :  { %v868_v52 = vadd.f32 %v867_v0, %v866_v19 }
 0x169   :  { %v869_v40 = vrot.slane %v868_v52, 4 }
 0x16b   :  { %v870_v15 = vadd.f32 %v869_v40, %v868_v52 }
 0x16d   :  { %v871_v23 = vrot.slane %v870_v15, 2 }
 0x16f   :  { %v872_v26 = vadd.f32 %v871_v23, %v870_v15 }
 0x171   :  { %v873_v2 = vrot.slane %v872_v26, 1 }
 0x173   :  { %v874_v11 = vadd.f32 %v873_v2, %v872_v26 }
 0x175   :  { %v875_v44 = vmul.f32 0.00591716, %v874_v11 }
 0x177   :  { %v928_v10 = vsel %vm927_vm4, %v926_v59, %v875_v44 }
 0x178   :  { %v930_v42 = vsel %vm929_vm5, %v928_v10, %v924_v33 }
 0x179   :  { %1184 = vmatmul.mubr.msk.f32.vlgmr.msra.gmra.mrb[20].mxu1 %vm704_vm1, %v930_v42 }
 0x24c   :  { %v1009_v41 = vpop.f32.mrb[20].mxu1 }
 0x24d   :  { %v1010_v31 = vadd.f32 %v1083_v9, %v1009_v41  ;;  %v1185_v4 = vpop.f32.mrb[21].mxu1 }
 0x24f   :  { %v1013_v45 = vmax.f32 %v1010_v31, 0.0 }
 0x251   :  { %v1021_v57 = vmul.f32 %v1085_v38, %v1013_v45 }
 0x253   :  { %v1023_v55 = vsel %vm1022_vm6, %v1021_v57, 0.0 }
 0x254   :  { %1024 = vadd.xlane.f32.xlu0 %v1023_v55 }
 0x2e1   :  { %v1025_v5 = vpop.xlane.xlu0 %1024 }
 0x2e2   :  { %v1027_v28 = vsel %vm1026_vm7, %v1025_v5, 0.0 }
 0x2e3   :  { %v1028_v12 = vrot.slane %v1027_v28, 4 }
 0x2e5   :  { %v1029_v35 = vadd.f32 %v1028_v12, %v1027_v28 }
 0x2e7   :  { %v1030_v54 = vrot.slane %v1029_v35, 2 }
 0x2e9   :  { %v1031_v17 = vadd.f32 %v1030_v54, %v1029_v35 }
 0x2eb   :  { %v1032_v14 = vrot.slane %v1031_v17, 1 }
 0x2ed   :  { %v1033_v50 = vadd.f32 %v1032_v14, %v1031_v17 }
 0x2ef   :  { %1035 = vst.msk [vmem:[#allocation5] sm:$0x1] %vm1034_vm8, %v1033_v50 }
 0x2f0   :  { %1275 = shalt.err (!%p1272_p12)
}
 0x2f1   :  { %s1276_s19 = scalar_lea.hbm %s1820_s7, 16 }
 0x2f2   :  { %p1277_p13 = scmp.ne.s32.totalorder %s1820_s7, %s1276_s19  ;;  %p1280_p0 = scmp.lt.u32.totalorder %s1276_s19, %s1820_s7 }
 0x2f4   :  { %p1282_p1 = pnand %p1280_p0, %p1277_p13 }
 0x2f6   :  { %1285 = shalt.err (!%p1282_p1)
}
 0x2f7   :  { %1045 = dma.vmem_to_hbm [thread:$0]  %s1043_s15, 16, %s1820_s7, [#allocation4]  }
 0x2f8   :  { %1288 = dma.done.wait [#allocation4], 16  }
 0x2f9   :  { %1289 = vsyncadd [#allocation4], 4294967280 }
 0x2fa   :  { %1049 = vsyncpa [#allocation3], 1 }
 0x2fb   :  { %1050 = vsyncpa [#allocation4], 1 }

</bundles_post_ra>
